<compile_context>
chip_gen: v7x
topology: tpu7x:2x2x1
jax: 0.10.0
libtpu: 0.0.40
codegen_flags: <defaults>
</compile_context>

<pallas_src>
import jax
import jax.numpy as jnp
from jax.experimental import pallas as pl
from jax.experimental.pallas import tpu as pltpu


def _round_up(n, m):
    return ((n + m - 1) // m) * m


def _choose_batch_tile(batch):
    """Lane tile (multiple of 128) for the batch axis; prefers >= 2 grid steps."""
    bp128 = _round_up(batch, 128)
    tb = 128
    for cand in (256, 512, 1024):
        if bp128 >= 2 * cand:
            tb = cand
    return tb, _round_up(batch, tb)


# ----------------------------- Pallas kernel ---------------------------------

def deepcrossing_kernel(x_ref, w1_ref, b1_ref, w2_ref, b2_ref, wd_ref, bd_ref,
                        out_ref):
    """One batch tile (batch on lanes): 3 residual blocks + dense head + sigmoid.

    x_ref : [D, TB]   bf16   features on sublanes, batch on lanes
    w1_ref: [3, H, D] bf16   (z1 = W1ᵀ @ x)
    b1_ref: [3, H, 1] f32
    w2_ref: [3, D, H] bf16
    b2_ref: [3, D, 1] f32
    wd_ref: [Oc, D]   bf16   (Oc = output_dim rounded up to 8; extra rows are zero)
    bd_ref: [Oc, 1]   f32
    out_ref:[O, TB]   f32    lane-dense store, no padded output columns
    """
    O = out_ref.shape[0]
    h = x_ref[...].astype(jnp.float32)                       # f32 residual carry
    for i in range(3):                                        # static unroll: 3 blocks
        z1 = jnp.dot(w1_ref[i], h.astype(jnp.bfloat16),
                     preferred_element_type=jnp.float32) + b1_ref[i]
        z1 = jnp.maximum(z1, 0.0)
        z2 = jnp.dot(w2_ref[i], z1.astype(jnp.bfloat16),
                     preferred_element_type=jnp.float32) + b2_ref[i]
        z2 = jnp.maximum(z2, 0.0)
        h = jnp.maximum(z2 + h, 0.0)                          # ReLU after residual add
    logits = jnp.dot(wd_ref[...], h.astype(jnp.bfloat16),
                     preferred_element_type=jnp.float32) + bd_ref[...]   # [Oc, TB]
    out_ref[...] = jax.nn.sigmoid(logits[:O, :])              # [O, TB] lane-dense


def deepcrossing_pallas(x_t, kp, *, tb):
    """x_t: [D, Bp] bf16 with Bp % tb == 0; kp: transposed/bf16 kernel params."""
    D, Bp = x_t.shape
    H = kp["w1"].shape[1]
    Oc = kp["wd"].shape[0]
    O = kp["out_dim"]
    cw = lambda i: (0, 0, 0)      # weights/biases: constant block -> VMEM-resident
    c2 = lambda i: (0, 0)

    weight_bytes = sum(int(kp[k].size) * kp[k].dtype.itemsize
                       for k in ("w1", "b1", "w2", "b2", "wd", "bd"))
    cost = pl.CostEstimate(
        flops=int(2 * Bp * (3 * (D * H + H * D) + D * Oc)),
        transcendentals=int(O * Bp),
        bytes_accessed=int(x_t.size) * x_t.dtype.itemsize + weight_bytes + O * Bp * 4,
    )

    return pl.pallas_call(
        deepcrossing_kernel,
        out_shape=jax.ShapeDtypeStruct((O, Bp), jnp.float32),
        grid_spec=pltpu.PrefetchScalarGridSpec(
            num_scalar_prefetch=0,
            grid=(Bp // tb,),
            in_specs=[
                pl.BlockSpec((D, tb), lambda i: (0, i)),   # pipelined activation tile
                pl.BlockSpec(tuple(kp["w1"].shape), cw),
                pl.BlockSpec(tuple(kp["b1"].shape), cw),
                pl.BlockSpec(tuple(kp["w2"].shape), cw),
                pl.BlockSpec(tuple(kp["b2"].shape), cw),
                pl.BlockSpec(tuple(kp["wd"].shape), c2),
                pl.BlockSpec(tuple(kp["bd"].shape), c2),
            ],
            out_specs=pl.BlockSpec((O, tb), lambda i: (0, i)),
        ),
        compiler_params=pltpu.CompilerParams(
            dimension_semantics=("parallel",),      # megacore sharding on v7x
            vmem_limit_bytes=32 * 1024 * 1024,      # footprint << 1 MiB; safe everywhere
        ),
        cost_estimate=cost,
    )(x_t, kp["w1"], kp["b1"], kp["w2"], kp["b2"], kp["wd"], kp["bd"])


# ------------------------------ Model glue -----------------------------------

def init_params(key, input_dim, hidden_dim, output_dim, vocab_sizes, emb_len):
    """Deterministic synthetic parameters (row-major: y = x @ W + b)."""
    keys = jax.random.split(key, 6 + len(vocab_sizes))
    scale = 0.1
    return {
        "w1": scale * jax.random.normal(keys[0], (3, input_dim, hidden_dim), jnp.float32),
        "b1": scale * jax.random.normal(keys[1], (3, 1, hidden_dim), jnp.float32),
        "w2": scale * jax.random.normal(keys[2], (3, hidden_dim, input_dim), jnp.float32),
        "b2": scale * jax.random.normal(keys[3], (3, 1, input_dim), jnp.float32),
        "wd": scale * jax.random.normal(keys[4], (input_dim, output_dim), jnp.float32),
        "bd": scale * jax.random.normal(keys[5], (1, output_dim), jnp.float32),
        "emb": [scale * jax.random.normal(keys[6 + i], (v, emb_len), jnp.float32)
                for i, v in enumerate(vocab_sizes)],
    }


def prepare_kernel_params(params):
    """Transpose weights for the batch-on-lanes layout and cast MXU operands to bf16."""
    D = params["w1"].shape[1]
    O = params["wd"].shape[1]
    Oc = _round_up(O, 8)                               # pad head rows to a sublane group
    return {
        "w1": jnp.transpose(params["w1"], (0, 2, 1)).astype(jnp.bfloat16),   # [3,H,D]
        "b1": jnp.transpose(params["b1"], (0, 2, 1)),                        # [3,H,1]
        "w2": jnp.transpose(params["w2"], (0, 2, 1)).astype(jnp.bfloat16),   # [3,D,H]
        "b2": jnp.transpose(params["b2"], (0, 2, 1)),                        # [3,D,1]
        "wd": jnp.pad(params["wd"].T, ((0, Oc - O), (0, 0))).astype(jnp.bfloat16),  # [Oc,D]
        "bd": jnp.pad(params["bd"].T, ((0, Oc - O), (0, 0))),                # [Oc,1]
        "out_dim": int(O),
    }


def embed_concat(x, params, cat_col_num):
    """x: [B, cat_col_num + num_numeric]; first cat_col_num cols are category indices."""
    cat_x = x[:, :cat_col_num].astype(jnp.int32)
    num_x = x[:, cat_col_num:]
    pieces = [num_x]
    for i in range(cat_col_num):
        pieces.append(jnp.take(params["emb"][i], cat_x[:, i], axis=0))
    return jnp.concatenate(pieces, axis=1)             # [B, input_dim]


def deepcrossing_forward(x, params, kparams, cat_col_num):
    # TODO(synk): the embedding gather + concat stays in plain JAX; fusing it into
    # the kernel via scalar prefetch is not worth it at these sizes.
    h = embed_concat(x, params, cat_col_num)           # [B, D] f32
    B, D = h.shape
    tb, Bp = _choose_batch_tile(B)
    # Batch-on-lanes layout, bf16 in HBM, zero-pad only the batch (lane) axis.
    x_t = jnp.pad(h.T.astype(jnp.bfloat16), ((0, 0), (0, Bp - B)))   # [D, Bp]
    out_t = deepcrossing_pallas(x_t, kparams, tb=tb)   # [O, Bp] f32
    return out_t[:, :B].T                              # [B, O]


# ------------------------------- References ----------------------------------

def reference_forward_f32(x, params, cat_col_num):
    """Pure-f32 reference with the original PyTorch semantics."""
    h = embed_concat(x, params, cat_col_num)
    for i in range(3):
        z1 = jnp.maximum(h @ params["w1"][i] + params["b1"][i], 0.0)
        z2 = jnp.maximum(z1 @ params["w2"][i] + params["b2"][i], 0.0)
        h = jnp.maximum(z2 + h, 0.0)
    return jax.nn.sigmoid(h @ params["wd"] + params["bd"])


def reference_forward_mixed(x, params, cat_col_num):
    """Reference matching the kernel's precision (bf16 input + MXU operands, f32 rest)."""
    def mm(a, b):
        return jnp.dot(a.astype(jnp.bfloat16), b.astype(jnp.bfloat16),
                       preferred_element_type=jnp.float32)
    h = embed_concat(x, params, cat_col_num).astype(jnp.bfloat16).astype(jnp.float32)
    for i in range(3):
        z1 = jnp.maximum(mm(h, params["w1"][i]) + params["b1"][i], 0.0)
        z2 = jnp.maximum(mm(z1, params["w2"][i]) + params["b2"][i], 0.0)
        h = jnp.maximum(z2 + h, 0.0)
    return jax.nn.sigmoid(mm(h, params["wd"]) + params["bd"])


# --------------------------------- Main ---------------------------------------

if __name__ == "__main__":
    # Small config: 2 categorical columns (vocab 10, 7), emb_len=4, 8 numeric cols.
    batch = 8
    cat_col_num = 2
    vocab_sizes = (10, 7)
    emb_len = 4
    num_numeric = 8
    input_dim = num_numeric + cat_col_num * emb_len   # 16
    hidden_dim = 32
    output_dim = 1

    key = jax.random.PRNGKey(0)
    k_idx, k_num, k_param = jax.random.split(key, 3)

    cat_part = jnp.stack(
        [jax.random.randint(jax.random.fold_in(k_idx, i), (batch,), 0, v)
         for i, v in enumerate(vocab_sizes)], axis=1).astype(jnp.float32)
    num_part = jax.random.normal(k_num, (batch, num_numeric), jnp.float32)
    x = jnp.concatenate([cat_part, num_part], axis=1)          # [8, 10]

    params = init_params(k_param, input_dim, hidden_dim, output_dim,
                         vocab_sizes, emb_len)
    kparams = prepare_kernel_params(params)

    out = deepcrossing_forward(x, params, kparams, cat_col_num)
    out = jax.block_until_ready(out)
    assert out.shape == (batch, output_dim)

    ref_mixed = reference_forward_mixed(x, params, cat_col_num)
    ref_f32 = reference_forward_f32(x, params, cat_col_num)
    assert jnp.allclose(out, ref_mixed, atol=2e-3), \
        f"mismatch vs mixed-precision reference: {jnp.max(jnp.abs(out - ref_mixed))}"
    assert jnp.allclose(out, ref_f32, atol=1e-2), \
        f"mismatch vs f32 reference: {jnp.max(jnp.abs(out - ref_f32))}"

    print("KERNEL_OK")
</pallas_src>

<mosaic_0001>
module attributes {stable_mosaic.version = 11 : i64} {
  func.func @deepcrossing_kernel(%arg0: i32, %arg1: memref<16x128xbf16, #tpu.memory_space<vmem>>, %arg2: memref<3x32x16xbf16, #tpu.memory_space<vmem>>, %arg3: memref<3x32x1xf32, #tpu.memory_space<vmem>>, %arg4: memref<3x16x32xbf16, #tpu.memory_space<vmem>>, %arg5: memref<3x16x1xf32, #tpu.memory_space<vmem>>, %arg6: memref<8x16xbf16, #tpu.memory_space<vmem>>, %arg7: memref<8x1xf32, #tpu.memory_space<vmem>>, %arg8: memref<1x128xf32, #tpu.memory_space<vmem>>) attributes {dimension_semantics = [#tpu.dimension_semantics<parallel>], iteration_bounds = array<i64: 1>, scalar_prefetch = 0 : i64, scratch_operands = 0 : i64, tpu.core_type = #tpu.core_type<tc>, window_params = [{transform_indices = @transform_0, window_bounds = array<i64: 16, 128>}, {pipeline_mode = #tpu.pipeline_mode<synchronous>, transform_indices = @transform_1, window_bounds = array<i64: 3, 32, 16>}, {pipeline_mode = #tpu.pipeline_mode<synchronous>, transform_indices = @transform_2, window_bounds = array<i64: 3, 32, 1>}, {pipeline_mode = #tpu.pipeline_mode<synchronous>, transform_indices = @transform_3, window_bounds = array<i64: 3, 16, 32>}, {pipeline_mode = #tpu.pipeline_mode<synchronous>, transform_indices = @transform_4, window_bounds = array<i64: 3, 16, 1>}, {pipeline_mode = #tpu.pipeline_mode<synchronous>, transform_indices = @transform_5, window_bounds = array<i64: 8, 16>}, {pipeline_mode = #tpu.pipeline_mode<synchronous>, transform_indices = @transform_6, window_bounds = array<i64: 8, 1>}, {transform_indices = @transform_7, window_bounds = array<i64: 1, 128>}]} {
    %c0 = arith.constant 0 : index
    %c0_0 = arith.constant 0 : index
    %0 = vector.load %arg1[%c0, %c0_0] : memref<16x128xbf16, #tpu.memory_space<vmem>>, vector<16x128xbf16>
    %1 = arith.extf %0 : vector<16x128xbf16> to vector<16x128xf32>
    %c0_1 = arith.constant 0 : index
    %c0_2 = arith.constant 0 : index
    %c0_3 = arith.constant 0 : index
    %2 = vector.load %arg2[%c0_1, %c0_2, %c0_3] : memref<3x32x16xbf16, #tpu.memory_space<vmem>>, vector<1x32x16xbf16>
    %3 = vector.shape_cast %2 : vector<1x32x16xbf16> to vector<32x16xbf16>
    %4 = arith.truncf %1 : vector<16x128xf32> to vector<16x128xbf16>
    %cst = arith.constant dense<0.000000e+00> : vector<32x128xf32>
    %5 = tpu.matmul %3, %4, %cst {dimension_numbers = #tpu.dot_dimension_numbers<[1], [0], [0], [1], [0, 0, 1, 1], [], []>} : vector<32x16xbf16>, vector<16x128xbf16>, vector<32x128xf32> -> vector<32x128xf32>
    %c0_4 = arith.constant 0 : index
    %c0_5 = arith.constant 0 : index
    %c0_6 = arith.constant 0 : index
    %6 = vector.load %arg3[%c0_4, %c0_5, %c0_6] : memref<3x32x1xf32, #tpu.memory_space<vmem>>, vector<1x32x1xf32>
    %7 = vector.shape_cast %6 : vector<1x32x1xf32> to vector<32x1xf32>
    %8 = vector.broadcast %7 : vector<32x1xf32> to vector<32x128xf32>
    %9 = arith.addf %5, %8 : vector<32x128xf32>
    %cst_7 = arith.constant 0.000000e+00 : f32
    %10 = vector.broadcast %cst_7 : f32 to vector<32x128xf32>
    %11 = arith.maximumf %9, %10 : vector<32x128xf32>
    %c0_8 = arith.constant 0 : index
    %c0_9 = arith.constant 0 : index
    %c0_10 = arith.constant 0 : index
    %12 = vector.load %arg4[%c0_8, %c0_9, %c0_10] : memref<3x16x32xbf16, #tpu.memory_space<vmem>>, vector<1x16x32xbf16>
    %13 = vector.shape_cast %12 : vector<1x16x32xbf16> to vector<16x32xbf16>
    %14 = arith.truncf %11 : vector<32x128xf32> to vector<32x128xbf16>
    %cst_11 = arith.constant dense<0.000000e+00> : vector<16x128xf32>
    %15 = tpu.matmul %13, %14, %cst_11 {dimension_numbers = #tpu.dot_dimension_numbers<[1], [0], [0], [1], [0, 0, 1, 1], [], []>} : vector<16x32xbf16>, vector<32x128xbf16>, vector<16x128xf32> -> vector<16x128xf32>
    %c0_12 = arith.constant 0 : index
    %c0_13 = arith.constant 0 : index
    %c0_14 = arith.constant 0 : index
    %16 = vector.load %arg5[%c0_12, %c0_13, %c0_14] : memref<3x16x1xf32, #tpu.memory_space<vmem>>, vector<1x16x1xf32>
    %17 = vector.shape_cast %16 : vector<1x16x1xf32> to vector<16x1xf32>
    %18 = vector.broadcast %17 : vector<16x1xf32> to vector<16x128xf32>
    %19 = arith.addf %15, %18 : vector<16x128xf32>
    %cst_15 = arith.constant 0.000000e+00 : f32
    %20 = vector.broadcast %cst_15 : f32 to vector<16x128xf32>
    %21 = arith.maximumf %19, %20 : vector<16x128xf32>
    %22 = arith.addf %21, %1 : vector<16x128xf32>
    %cst_16 = arith.constant 0.000000e+00 : f32
    %23 = vector.broadcast %cst_16 : f32 to vector<16x128xf32>
    %24 = arith.maximumf %22, %23 : vector<16x128xf32>
    %c1 = arith.constant 1 : index
    %c0_17 = arith.constant 0 : index
    %c0_18 = arith.constant 0 : index
    %25 = vector.load %arg2[%c1, %c0_17, %c0_18] : memref<3x32x16xbf16, #tpu.memory_space<vmem>>, vector<1x32x16xbf16>
    %26 = vector.shape_cast %25 : vector<1x32x16xbf16> to vector<32x16xbf16>
    %27 = arith.truncf %24 : vector<16x128xf32> to vector<16x128xbf16>
    %cst_19 = arith.constant dense<0.000000e+00> : vector<32x128xf32>
    %28 = tpu.matmul %26, %27, %cst_19 {dimension_numbers = #tpu.dot_dimension_numbers<[1], [0], [0], [1], [0, 0, 1, 1], [], []>} : vector<32x16xbf16>, vector<16x128xbf16>, vector<32x128xf32> -> vector<32x128xf32>
    %c1_20 = arith.constant 1 : index
    %c0_21 = arith.constant 0 : index
    %c0_22 = arith.constant 0 : index
    %29 = vector.load %arg3[%c1_20, %c0_21, %c0_22] : memref<3x32x1xf32, #tpu.memory_space<vmem>>, vector<1x32x1xf32>
    %30 = vector.shape_cast %29 : vector<1x32x1xf32> to vector<32x1xf32>
    %31 = vector.broadcast %30 : vector<32x1xf32> to vector<32x128xf32>
    %32 = arith.addf %28, %31 : vector<32x128xf32>
    %cst_23 = arith.constant 0.000000e+00 : f32
    %33 = vector.broadcast %cst_23 : f32 to vector<32x128xf32>
    %34 = arith.maximumf %32, %33 : vector<32x128xf32>
    %c1_24 = arith.constant 1 : index
    %c0_25 = arith.constant 0 : index
    %c0_26 = arith.constant 0 : index
    %35 = vector.load %arg4[%c1_24, %c0_25, %c0_26] : memref<3x16x32xbf16, #tpu.memory_space<vmem>>, vector<1x16x32xbf16>
    %36 = vector.shape_cast %35 : vector<1x16x32xbf16> to vector<16x32xbf16>
    %37 = arith.truncf %34 : vector<32x128xf32> to vector<32x128xbf16>
    %cst_27 = arith.constant dense<0.000000e+00> : vector<16x128xf32>
    %38 = tpu.matmul %36, %37, %cst_27 {dimension_numbers = #tpu.dot_dimension_numbers<[1], [0], [0], [1], [0, 0, 1, 1], [], []>} : vector<16x32xbf16>, vector<32x128xbf16>, vector<16x128xf32> -> vector<16x128xf32>
    %c1_28 = arith.constant 1 : index
    %c0_29 = arith.constant 0 : index
    %c0_30 = arith.constant 0 : index
    %39 = vector.load %arg5[%c1_28, %c0_29, %c0_30] : memref<3x16x1xf32, #tpu.memory_space<vmem>>, vector<1x16x1xf32>
    %40 = vector.shape_cast %39 : vector<1x16x1xf32> to vector<16x1xf32>
    %41 = vector.broadcast %40 : vector<16x1xf32> to vector<16x128xf32>
    %42 = arith.addf %38, %41 : vector<16x128xf32>
    %cst_31 = arith.constant 0.000000e+00 : f32
    %43 = vector.broadcast %cst_31 : f32 to vector<16x128xf32>
    %44 = arith.maximumf %42, %43 : vector<16x128xf32>
    %45 = arith.addf %44, %24 : vector<16x128xf32>
    %cst_32 = arith.constant 0.000000e+00 : f32
    %46 = vector.broadcast %cst_32 : f32 to vector<16x128xf32>
    %47 = arith.maximumf %45, %46 : vector<16x128xf32>
    %c2 = arith.constant 2 : index
    %c0_33 = arith.constant 0 : index
    %c0_34 = arith.constant 0 : index
    %48 = vector.load %arg2[%c2, %c0_33, %c0_34] : memref<3x32x16xbf16, #tpu.memory_space<vmem>>, vector<1x32x16xbf16>
    %49 = vector.shape_cast %48 : vector<1x32x16xbf16> to vector<32x16xbf16>
    %50 = arith.truncf %47 : vector<16x128xf32> to vector<16x128xbf16>
    %cst_35 = arith.constant dense<0.000000e+00> : vector<32x128xf32>
    %51 = tpu.matmul %49, %50, %cst_35 {dimension_numbers = #tpu.dot_dimension_numbers<[1], [0], [0], [1], [0, 0, 1, 1], [], []>} : vector<32x16xbf16>, vector<16x128xbf16>, vector<32x128xf32> -> vector<32x128xf32>
    %c2_36 = arith.constant 2 : index
    %c0_37 = arith.constant 0 : index
    %c0_38 = arith.constant 0 : index
    %52 = vector.load %arg3[%c2_36, %c0_37, %c0_38] : memref<3x32x1xf32, #tpu.memory_space<vmem>>, vector<1x32x1xf32>
    %53 = vector.shape_cast %52 : vector<1x32x1xf32> to vector<32x1xf32>
    %54 = vector.broadcast %53 : vector<32x1xf32> to vector<32x128xf32>
    %55 = arith.addf %51, %54 : vector<32x128xf32>
    %cst_39 = arith.constant 0.000000e+00 : f32
    %56 = vector.broadcast %cst_39 : f32 to vector<32x128xf32>
    %57 = arith.maximumf %55, %56 : vector<32x128xf32>
    %c2_40 = arith.constant 2 : index
    %c0_41 = arith.constant 0 : index
    %c0_42 = arith.constant 0 : index
    %58 = vector.load %arg4[%c2_40, %c0_41, %c0_42] : memref<3x16x32xbf16, #tpu.memory_space<vmem>>, vector<1x16x32xbf16>
    %59 = vector.shape_cast %58 : vector<1x16x32xbf16> to vector<16x32xbf16>
    %60 = arith.truncf %57 : vector<32x128xf32> to vector<32x128xbf16>
    %cst_43 = arith.constant dense<0.000000e+00> : vector<16x128xf32>
    %61 = tpu.matmul %59, %60, %cst_43 {dimension_numbers = #tpu.dot_dimension_numbers<[1], [0], [0], [1], [0, 0, 1, 1], [], []>} : vector<16x32xbf16>, vector<32x128xbf16>, vector<16x128xf32> -> vector<16x128xf32>
    %c2_44 = arith.constant 2 : index
    %c0_45 = arith.constant 0 : index
    %c0_46 = arith.constant 0 : index
    %62 = vector.load %arg5[%c2_44, %c0_45, %c0_46] : memref<3x16x1xf32, #tpu.memory_space<vmem>>, vector<1x16x1xf32>
    %63 = vector.shape_cast %62 : vector<1x16x1xf32> to vector<16x1xf32>
    %64 = vector.broadcast %63 : vector<16x1xf32> to vector<16x128xf32>
    %65 = arith.addf %61, %64 : vector<16x128xf32>
    %cst_47 = arith.constant 0.000000e+00 : f32
    %66 = vector.broadcast %cst_47 : f32 to vector<16x128xf32>
    %67 = arith.maximumf %65, %66 : vector<16x128xf32>
    %68 = arith.addf %67, %47 : vector<16x128xf32>
    %cst_48 = arith.constant 0.000000e+00 : f32
    %69 = vector.broadcast %cst_48 : f32 to vector<16x128xf32>
    %70 = arith.maximumf %68, %69 : vector<16x128xf32>
    %c0_49 = arith.constant 0 : index
    %c0_50 = arith.constant 0 : index
    %71 = vector.load %arg6[%c0_49, %c0_50] : memref<8x16xbf16, #tpu.memory_space<vmem>>, vector<8x16xbf16>
    %72 = arith.truncf %70 : vector<16x128xf32> to vector<16x128xbf16>
    %cst_51 = arith.constant dense<0.000000e+00> : vector<8x128xf32>
    %73 = tpu.matmul %71, %72, %cst_51 {dimension_numbers = #tpu.dot_dimension_numbers<[1], [0], [0], [1], [0, 0, 1, 1], [], []>} : vector<8x16xbf16>, vector<16x128xbf16>, vector<8x128xf32> -> vector<8x128xf32>
    %c0_52 = arith.constant 0 : index
    %c0_53 = arith.constant 0 : index
    %74 = vector.load %arg7[%c0_52, %c0_53] : memref<8x1xf32, #tpu.memory_space<vmem>>, vector<8x1xf32>
    %75 = vector.broadcast %74 : vector<8x1xf32> to vector<8x128xf32>
    %76 = arith.addf %73, %75 : vector<8x128xf32>
    %77 = vector.extract_strided_slice %76 {offsets = [0, 0], sizes = [1, 128], strides = [1, 1]} : vector<8x128xf32> to vector<1x128xf32>
    %78 = arith.negf %77 : vector<1x128xf32>
    %79 = math.exp %78 : vector<1x128xf32>
    %cst_54 = arith.constant 1.000000e+00 : f32
    %80 = vector.broadcast %cst_54 : f32 to vector<1x128xf32>
    %81 = arith.addf %80, %79 : vector<1x128xf32>
    %82 = arith.divf %80, %81 : vector<1x128xf32>
    %c0_55 = arith.constant 0 : index
    %c0_56 = arith.constant 0 : index
    %83 = vector.load %arg8[%c0_55, %c0_56] : memref<1x128xf32, #tpu.memory_space<vmem>>, vector<1x128xf32>
    tpu.vector_store %arg8[%c0_55, %c0_56], %82 {strides = array<i32>} : memref<1x128xf32, #tpu.memory_space<vmem>>, vector<1x128xf32>,
    return
  }
  func.func @transform_0(%arg0: i32) -> (i32, i32) {
    %c0_i32 = arith.constant 0 : i32
    %c0_i32_0 = arith.constant 0 : i32
    return %c0_i32, %arg0 : i32, i32
  }
  func.func @transform_1(%arg0: i32) -> (i32, i32, i32) {
    %c0_i32 = arith.constant 0 : i32
    %c0_i32_0 = arith.constant 0 : i32
    %c0_i32_1 = arith.constant 0 : i32
    %c0_i32_2 = arith.constant 0 : i32
    return %c0_i32, %c0_i32_0, %c0_i32_1 : i32, i32, i32
  }
  func.func @transform_2(%arg0: i32) -> (i32, i32, i32) {
    %c0_i32 = arith.constant 0 : i32
    %c0_i32_0 = arith.constant 0 : i32
    %c0_i32_1 = arith.constant 0 : i32
    %c0_i32_2 = arith.constant 0 : i32
    return %c0_i32, %c0_i32_0, %c0_i32_1 : i32, i32, i32
  }
  func.func @transform_3(%arg0: i32) -> (i32, i32, i32) {
    %c0_i32 = arith.constant 0 : i32
    %c0_i32_0 = arith.constant 0 : i32
    %c0_i32_1 = arith.constant 0 : i32
    %c0_i32_2 = arith.constant 0 : i32
    return %c0_i32, %c0_i32_0, %c0_i32_1 : i32, i32, i32
  }
  func.func @transform_4(%arg0: i32) -> (i32, i32, i32) {
    %c0_i32 = arith.constant 0 : i32
    %c0_i32_0 = arith.constant 0 : i32
    %c0_i32_1 = arith.constant 0 : i32
    %c0_i32_2 = arith.constant 0 : i32
    return %c0_i32, %c0_i32_0, %c0_i32_1 : i32, i32, i32
  }
  func.func @transform_5(%arg0: i32) -> (i32, i32) {
    %c0_i32 = arith.constant 0 : i32
    %c0_i32_0 = arith.constant 0 : i32
    %c0_i32_1 = arith.constant 0 : i32
    return %c0_i32, %c0_i32_0 : i32, i32
  }
  func.func @transform_6(%arg0: i32) -> (i32, i32) {
    %c0_i32 = arith.constant 0 : i32
    %c0_i32_0 = arith.constant 0 : i32
    %c0_i32_1 = arith.constant 0 : i32
    return %c0_i32, %c0_i32_0 : i32, i32
  }
  func.func @transform_7(%arg0: i32) -> (i32, i32) {
    %c0_i32 = arith.constant 0 : i32
    %c0_i32_0 = arith.constant 0 : i32
    return %c0_i32, %arg0 : i32, i32
  }
}

</mosaic_0001>

<bundles_post_ra>
// kernel: tpu_custom_call.1
= control target key start
LH: loop header
LB: loop body
LE: loop exit
PB: predicated region body
PF: predicated region fallthrough
CT: control target
= control target key end

     0   :  { %vm76_vm0 = vcmask 130048   ;;  %v784_v2 = vmov 0   ;;  %s961_s0 = inlined_call_operand.vmem [shape: bf16[16,128], index: 0, kind: input, shape index: {}]   ;;  %s962_s1 = inlined_call_operand.vmem [shape: bf16[3,32,16], index: 1, kind: input, shape index: {}]   ;;  %s963_s2 = inlined_call_operand.vmem [shape: f32[3,32,1], index: 2, kind: input, shape index: {}]   ;;  %s964_s3 = inlined_call_operand.vmem [shape: bf16[3,16,32], index: 3, kind: input, shape index: {}]   ;;  %s965_s4 = inlined_call_operand.vmem [shape: f32[3,16,1], index: 4, kind: input, shape index: {}]   ;;  %s966_s5 = inlined_call_operand.vmem [shape: bf16[8,16], index: 5, kind: input, shape index: {}]   ;;  %s967_s6 = inlined_call_operand.vmem [shape: f32[8,1], index: 6, kind: input, shape index: {}]   ;;  %s968_s7 = inlined_call_operand.hbm [shape: f32[1,128], index: 7, kind: output, shape index: {}]  }
   0x1   :  { %v831_v0 = vld [vmem:[%s961_s0] sm:$0xff]   ;;  %743 = vset.pattern.permute.xlu0 %v784_v2  ;;  %744 = vset.pattern.permute.xlu1 %v784_v2  ;;  %v747_v4 = vld [vmem:[%s962_s1 + $0x8] sm:$0xff]   ;;  %v38_v5 = vld [vmem:[%s963_s2 + $0x10] sm:$0xff] }
   0x2   :  { %v746_v1 = vld [vmem:[%s962_s1] sm:$0xff]   ;;  %691 = vmatprep.subr.bf16.mxu0 %v831_v0  ;;  %v37_v6 = vld [vmem:[%s963_s2 + $0x8] sm:$0xff]  ;;  %52 = vperm.xlu1 %744, %v38_v5   ;;  %v39_v7 = vld [vmem:[%s963_s2 + $0x18] sm:$0xff] }
   0x3   :  { %v36_v3 = vld [vmem:[%s963_s2] sm:$0xff]  ;;  %693 = vmatprep.mubr.msk.bf16.mxu0 %vm76_vm0, %v746_v1  ;;  %692 = vmatpush3.bf16.msra.mxu0 %v831_v0  ;;  %v141_v9 = vld [vmem:[%s965_s4 + $0x8] sm:$0xff] }
   0x4   :  { %42 = vperm.xlu0 %743, %v36_v3   ;;  %v140_v8 = vld [vmem:[%s965_s4] sm:$0xff] }
   0x5   :  { %v637_v10 = vld [vmem:[%s963_s2 + $0x20] sm:$0xff] }
   0x6   :  { %694 = vmatmul.mubr.msk.bf16.vlgmr.msra.gmra.mrb[0].mxu0 %vm76_vm0, %v747_v4  ;;  %57 = vperm.xlu1 %744, %v39_v7  }
   0x8   :  { %47 = vperm.xlu0 %743, %v37_v6  }
   0xa   :  { %149 = vperm.xlu1 %744, %v141_v9  }
   0xc   :  { %144 = vperm.xlu0 %743, %v140_v8  }
   0xd   :  { %12 = vsyncpa [#allocation3], 0  ;;  %v638_v11 = vld [vmem:[%s963_s2 + $0x28] sm:$0xff]  ;;  %v639_v12 = vld [vmem:[%s963_s2 + $0x30] sm:$0xff]  ;;  %v785_v23 = vmov 0.0   ;;  %vm786_vm1 = vmmov 0   ;;  %v30_v46 = vunpack.c.l.bf16 %v831_v0  ;;  %v31_v51 = vunpack.c.h.bf16 %v831_v0 }
   0xe   :  { %226 = vperm.xlu1 %744, %v638_v11   ;;  %v640_v13 = vld [vmem:[%s963_s2 + $0x38] sm:$0xff]  ;;  %v647_v14 = vld [vmem:[%s965_s4 + $0x10] sm:$0xff]  ;;  %v655_v16 = vld [vmem:[%s963_s2 + $0x40] sm:$0xff]  ;;  %697 = vmatprep.subr.bf16.mxu1 %v785_v23  ;;  %vm157_vm2 = vcmask 261120   ;;  %s787_s8 = smov [#allocation2]  }
   0xf   :  { %v648_v15 = vld [vmem:[%s965_s4 + $0x18] sm:$0xff]  ;;  %v656_v17 = vld [vmem:[%s963_s2 + $0x48] sm:$0xff]  ;;  %v657_v18 = vld [vmem:[%s963_s2 + $0x50] sm:$0xff]  ;;  %701 = vmatprep.mubr.msk.bf16.mxu1 %vm786_vm1, %v785_v23  ;;  %s618_s0 = sshll.u32 %s787_s8, 4  ;;  %s619_s0 = int_to_ptr.vmem [resolvable:$true] %s618_s0 }
  0x10   :  { %221 = vperm.xlu0 %743, %v637_v10   ;;  %v658_v19 = vld [vmem:[%s963_s2 + $0x58] sm:$0xff]  ;;  %v665_v20 = vld [vmem:[%s965_s4 + $0x20] sm:$0xff]  ;;  %v666_v21 = vld [vmem:[%s965_s4 + $0x28] sm:$0xff]  ;;  %s760_s9 = scalar_lea.vmem %s619_s0, 16  ;;  %p765_p1 = scmp.lt.s32.totalorder %s619_s0, %s619_s0 }
  0x11   :  { %v556_v22 = vld [vmem:[%s967_s6] sm:$0xff]  ;;  %v749_v43 = vld [vmem:[%s962_s1 + $0x10] sm:$0xff]   ;;  %v750_v61 = vld [vmem:[%s962_s1 + $0x18] sm:$0xff]   ;;  %p761_p0 = scmp.ne.s32.totalorder %s619_s0, %s760_s9 }
  0x12   :  { %236 = vperm.xlu1 %744, %v640_v13   ;;  %v748_v42 = vld [vmem:[%s964_s3] sm:$0xff]   ;;  %707 = vmatprep.mubr.msk.bf16.mxu0 %vm76_vm0, %v749_v43 }
  0x14   :  { %231 = vperm.xlu0 %743, %v639_v12  }
  0x16   :  { %323 = vperm.xlu1 %744, %v648_v15  }
  0x18   :  { %318 = vperm.xlu0 %743, %v647_v14  }
  0x1a   :  { %399 = vperm.xlu1 %744, %v656_v17   ;;  %v752_v17 = vld [vmem:[%s962_s1 + $0x20] sm:$0xff]  }
  0x1c   :  { %394 = vperm.xlu0 %743, %v655_v16   ;;  %v751_v16 = vld [vmem:[%s964_s3 + $0x8] sm:$0xff]  }
  0x1e   :  { %409 = vperm.xlu1 %744, %v658_v19  }
  0x20   :  { %404 = vperm.xlu0 %743, %v657_v18  }
  0x22   :  { %496 = vperm.xlu1 %744, %v666_v21  }
  0x24   :  { %491 = vperm.xlu0 %743, %v665_v20  }
  0x28   :  { %559 = vperm.xlu0 %743, %v556_v22  }
  0x81   :  { %v53_v24 = vpop.permute.xlu1 %52 }
  0x83   :  { %v43_v25 = vpop.permute.xlu0 %42 }
  0x85   :  { %v58_v29 = vpop.permute.xlu1 %57 }
  0x87   :  { %v48_v32 = vpop.permute.xlu0 %47 }
  0x89   :  { %v150_v49 = vpop.permute.xlu1 %149 }
  0x8b   :  { %v145_v44 = vpop.permute.xlu0 %144 }
  0x8d   :  { %v227_v63 = vpop.permute.xlu1 %226 }
  0x8f   :  { %v222_v62 = vpop.permute.xlu0 %221 }
  0x91   :  { %v237_v4 = vpop.permute.xlu1 %236 }
  0x93   :  { %v232_v0 = vpop.permute.xlu0 %231 }
  0x95   :  { %v324_v22 = vpop.permute.xlu1 %323 }
  0x97   :  { %v319_v18 = vpop.permute.xlu0 %318 }
  0xd9   :  { %v695_v26 = vpop.f32.mrb[0].mxu0 }
  0xda   :  { %v126_v27 = vadd.f32 %v695_v26, %v53_v24  ;;  %v117_v28 = vpop.f32.mrb[1].mxu0 }
  0xdb   :  { %v118_v30 = vadd.f32 %v117_v28, %v43_v25  ;;  %v696_v31 = vpop.f32.mrb[2].mxu0 }
  0xdc   :  { %v129_v33 = vadd.f32 %v696_v31, %v58_v29  ;;  %v120_v34 = vpop.f32.mrb[3].mxu0  ;;  %v134_v36 = vmax.f32 %v126_v27, 0.0 }
  0xdd   :  { %v121_v35 = vadd.f32 %v120_v34, %v48_v32  ;;  %v132_v38 = vmax.f32 %v118_v30, 0.0  ;;  %v753_v34 = vld [vmem:[%s962_s1 + $0x28] sm:$0xff]  }
  0xde   :  { %v135_v37 = vmax.f32 %v129_v33, 0.0 }
  0xdf   :  { %v133_v39 = vmax.f32 %v121_v35, 0.0  ;;  %v395_v35 = vpop.permute.xlu0 %394 }
  0xe0   :  { %v139_v40 = vpack.c.bf16 %v135_v37, %v134_v36  ;;  %v400_v36 = vpop.permute.xlu1 %399 }
  0xe1   :  { %v138_v41 = vpack.c.bf16 %v133_v39, %v132_v38 }
  0xe3   :  { %698 = vmatpush3.bf16.msra.mxu1 %v138_v41  ;;  %v405_v37 = vpop.permute.xlu0 %404 }
  0xe4   :  { %699 = vmatprep.subr.bf16.mxu1 %v785_v23  ;;  %v410_v41 = vpop.permute.xlu1 %409 }
  0xe7   :  { %700 = vmatpush3.bf16.msra.mxu1 %v139_v40 }
  0xe8   :  { %711 = vmatprep.subr.bf16.mxu1 %v785_v23 }
  0xea   :  { %702 = vmatmul.mubr.msk.bf16.vlgmr.msra.gmra.mrb[0].mxu1 %vm157_vm2, %v748_v42 }
  0xeb   :  { %715 = vmatprep.mubr.msk.bf16.mxu1 %vm786_vm1, %v785_v23 }
 0x1bd   :  { %v195_v45 = vpop.f32.mrb[0].mxu1 }
 0x1be   :  { %v196_v47 = vadd.f32 %v195_v45, %v145_v44  ;;  %v703_v48 = vpop.f32.mrb[1].mxu1 }
 0x1bf   :  { %v198_v50 = vpop.f32.mrb[2].mxu1 }
 0x1c0   :  { %v202_v52 = vmax.f32 %v196_v47, 0.0  ;;  %v199_v53 = vadd.f32 %v198_v50, %v150_v49  ;;  %v704_v54 = vpop.f32.mrb[3].mxu1 }
 0x1c1   :  { %v492_v54 = vpop.permute.xlu0 %491 }
 0x1c2   :  { %v204_v55 = vadd.f32 %v202_v52, %v30_v46  ;;  %v203_v56 = vmax.f32 %v199_v53, 0.0  ;;  %v754_v53 = vld [vmem:[%s964_s3 + $0x10] sm:$0xff]  }
 0x1c4   :  { %v205_v57 = vadd.f32 %v203_v56, %v31_v51  ;;  %v206_v58 = vmax.f32 %v204_v55, 0.0 }
 0x1c6   :  { %v207_v59 = vmax.f32 %v205_v57, 0.0 }
 0x1c8   :  { %v213_v60 = vpack.c.bf16 %v207_v59, %v206_v58 }
 0x1ca   :  { %705 = vmatprep.subr.bf16.mxu0 %v213_v60 }
 0x1cb   :  { %706 = vmatpush3.bf16.msra.mxu0 %v213_v60 }
 0x1ce   :  { %708 = vmatmul.mubr.msk.bf16.vlgmr.msra.gmra.mrb[4].mxu0 %vm76_vm0, %v750_v61 }
 0x1cf   :  { %721 = vmatprep.mubr.msk.bf16.mxu0 %vm76_vm0, %v752_v17 }
 0x2a1   :  { %v709_v1 = vpop.f32.mrb[4].mxu0 }
 0x2a2   :  { %v298_v2 = vadd.f32 %v709_v1, %v232_v0  ;;  %v289_v3 = vpop.f32.mrb[5].mxu0 }
 0x2a3   :  { %v290_v5 = vadd.f32 %v289_v3, %v222_v62  ;;  %v710_v6 = vpop.f32.mrb[6].mxu0 }
 0x2a4   :  { %v301_v7 = vadd.f32 %v710_v6, %v237_v4  ;;  %v292_v8 = vpop.f32.mrb[7].mxu0  ;;  %v306_v10 = vmax.f32 %v298_v2, 0.0  ;;  %v554_v4 = vld [vmem:[%s966_s5] sm:$0xf]  ;;  %s764_s5 = scalar_lea.vmem %s619_s0, 32 }
 0x2a5   :  { %v293_v9 = vadd.f32 %v292_v8, %v227_v63  ;;  %v304_v12 = vmax.f32 %v290_v5, 0.0  ;;  %v560_v5 = vpop.permute.xlu0 %559  ;;  %p766_p2 = scmp.lt.s32.totalorder %s764_s5, %s760_s9 }
 0x2a6   :  { %v307_v11 = vmax.f32 %v301_v7, 0.0 }
 0x2a7   :  { %v305_v13 = vmax.f32 %v293_v9, 0.0  ;;  %p767_p3 = por %p766_p2, %p765_p1 }
 0x2a8   :  { %v312_v14 = vpack.c.bf16 %v307_v11, %v306_v10 }
 0x2a9   :  { %v311_v15 = vpack.c.bf16 %v305_v13, %v304_v12  ;;  %p768_p4 = pnand %p767_p3, %p761_p0 }
 0x2ab   :  { %712 = vmatpush3.bf16.msra.mxu1 %v311_v15 }
 0x2ac   :  { %713 = vmatprep.subr.bf16.mxu1 %v785_v23 }
 0x2af   :  { %714 = vmatpush3.bf16.msra.mxu1 %v312_v14 }
 0x2b0   :  { %725 = vmatprep.subr.bf16.mxu1 %v785_v23 }
 0x2b2   :  { %716 = vmatmul.mubr.msk.bf16.vlgmr.msra.gmra.mrb[4].mxu1 %vm157_vm2, %v751_v16 }
 0x2b3   :  { %729 = vmatprep.mubr.msk.bf16.mxu1 %vm786_vm1, %v785_v23 }
 0x385   :  { %v368_v19 = vpop.f32.mrb[4].mxu1 }
 0x386   :  { %v369_v20 = vadd.f32 %v368_v19, %v319_v18  ;;  %v717_v21 = vpop.f32.mrb[5].mxu1 }
 0x387   :  { %v371_v24 = vpop.f32.mrb[6].mxu1 }
 0x388   :  { %v375_v25 = vmax.f32 %v369_v20, 0.0  ;;  %v372_v26 = vadd.f32 %v371_v24, %v324_v22  ;;  %v718_v27 = vpop.f32.mrb[7].mxu1 }
 0x38a   :  { %v377_v28 = vadd.f32 %v375_v25, %v206_v58  ;;  %v376_v29 = vmax.f32 %v372_v26, 0.0  ;;  %v497_v58 = vpop.permute.xlu1 %496 }
 0x38c   :  { %v378_v30 = vadd.f32 %v376_v29, %v207_v59  ;;  %v379_v31 = vmax.f32 %v377_v28, 0.0 }
 0x38e   :  { %v380_v32 = vmax.f32 %v378_v30, 0.0 }
 0x390   :  { %v386_v33 = vpack.c.bf16 %v380_v32, %v379_v31 }
 0x392   :  { %719 = vmatprep.subr.bf16.mxu0 %v386_v33 }
 0x393   :  { %720 = vmatpush3.bf16.msra.mxu0 %v386_v33 }
 0x394   :  { %733 = vmatprep.subr.bf16.mxu0 %v785_v23 }
 0x396   :  { %722 = vmatmul.mubr.msk.bf16.vlgmr.msra.gmra.mrb[8].mxu0 %vm76_vm0, %v753_v34 }
 0x397   :  { %735 = vmatprep.mubr.msk.bf16.mxu0 %vm786_vm1, %v785_v23 }
 0x469   :  { %v723_v38 = vpop.f32.mrb[8].mxu0 }
 0x46a   :  { %v471_v39 = vadd.f32 %v723_v38, %v405_v37  ;;  %v462_v40 = vpop.f32.mrb[9].mxu0 }
 0x46b   :  { %v463_v42 = vadd.f32 %v462_v40, %v395_v35  ;;  %v724_v43 = vpop.f32.mrb[10].mxu0 }
 0x46c   :  { %v474_v44 = vadd.f32 %v724_v43, %v410_v41  ;;  %v465_v45 = vpop.f32.mrb[11].mxu0  ;;  %v479_v47 = vmax.f32 %v471_v39, 0.0 }
 0x46d   :  { %v466_v46 = vadd.f32 %v465_v45, %v400_v36  ;;  %v477_v49 = vmax.f32 %v463_v42, 0.0 }
 0x46e   :  { %v480_v48 = vmax.f32 %v474_v44, 0.0 }
 0x46f   :  { %v478_v50 = vmax.f32 %v466_v46, 0.0 }
 0x470   :  { %v485_v51 = vpack.c.bf16 %v480_v48, %v479_v47 }
 0x471   :  { %v484_v52 = vpack.c.bf16 %v478_v50, %v477_v49 }
 0x473   :  { %726 = vmatpush3.bf16.msra.mxu1 %v484_v52 }
 0x474   :  { %727 = vmatprep.subr.bf16.mxu1 %v785_v23 }
 0x477   :  { %728 = vmatpush3.bf16.msra.mxu1 %v485_v51 }
 0x47a   :  { %730 = vmatmul.mubr.msk.bf16.vlgmr.msra.gmra.mrb[8].mxu1 %vm157_vm2, %v754_v53 }
 0x54d   :  { %v541_v55 = vpop.f32.mrb[8].mxu1 }
 0x54e   :  { %v542_v56 = vadd.f32 %v541_v55, %v492_v54  ;;  %v731_v57 = vpop.f32.mrb[9].mxu1 }
 0x54f   :  { %v544_v59 = vpop.f32.mrb[10].mxu1 }
 0x550   :  { %v548_v60 = vmax.f32 %v542_v56, 0.0  ;;  %v545_v61 = vadd.f32 %v544_v59, %v497_v58  ;;  %v732_v62 = vpop.f32.mrb[11].mxu1 }
 0x552   :  { %v550_v63 = vadd.f32 %v548_v60, %v379_v31  ;;  %v549_v0 = vmax.f32 %v545_v61, 0.0 }
 0x554   :  { %v551_v1 = vadd.f32 %v549_v0, %v380_v32  ;;  %v552_v23 = vmax.f32 %v550_v63, 0.0 }
 0x556   :  { %v553_v2 = vmax.f32 %v551_v1, 0.0 }
 0x558   :  { %v555_v3 = vpack.c.bf16 %v553_v2, %v552_v23 }
 0x55a   :  { %734 = vmatpush3.bf16.msra.mxu0 %v555_v3 }
 0x55d   :  { %736 = vmatmul.mubr.msk.bf16.vlgmr.msra.gmra.mrb[12].mxu0 %vm76_vm0, %v554_v4 }
 0x630   :  { %v599_v6 = vpop.f32.mrb[12].mxu0 }
 0x631   :  { %v600_v7 = vadd.f32 %v599_v6, %v560_v5  ;;  %v737_v8 = vpop.f32.mrb[13].mxu0 }
 0x632   :  { %v602_v9 = vpop.f32.mrb[14].mxu0 }
 0x633   :  { %v670_v10 = vmul.f32 -1.442695, %v600_v7  ;;  %v738_v11 = vpop.f32.mrb[15].mxu0 }
 0x635   :  { %756 = vpow2.f32 %v670_v10 }
 0x63f   :  { %v757_v12 = vpop.eup %756 }
 0x640   :  { %v608_v13 = vadd.f32 1.0, %v757_v12 }
 0x642   :  { %758 = vrcp.f32 %v608_v13 }
 0x64c   :  { %v759_v14 = vpop.eup %758 }
 0x64d   :  { %611 = vst [vmem:[#allocation2] sm:$0x1] %v759_v14 }
 0x64e   :  { %771 = shalt.err (!%p768_p4)
}
 0x64f   :  { %s772_s12 = scalar_lea.hbm %s968_s7, 16 }
 0x650   :  { %p773_p5 = scmp.ne.s32.totalorder %s968_s7, %s772_s12  ;;  %p776_p6 = scmp.lt.u32.totalorder %s772_s12, %s968_s7 }
 0x652   :  { %p778_p7 = pnand %p776_p6, %p773_p5 }
 0x654   :  { %781 = shalt.err (!%p778_p7)
}
 0x655   :  { %621 = dma.vmem_to_hbm [thread:$0]  %s619_s0, 16, %s968_s7, [#allocation3]  }
 0x656   :  { %782 = dma.done.wait [#allocation3], 16  }
 0x657   :  { %783 = vsyncadd [#allocation3], 4294967280 }
 0x658   :  { %625 = vsyncpa [#allocation3], 1 }

</bundles_post_ra>
